<compile_context>
chip_gen: v6e
topology: v6e:2x2x1
jax: 0.10.0
libtpu: 0.0.40
codegen_flags: <defaults>
</compile_context>

<pallas_src>
import jax
import jax.numpy as jnp
from jax.experimental import pallas as pl
from jax.experimental.pallas import tpu as pltpu


_LANES = 1024          # lane-dense last dim (multiple of 128 -> unmasked vst)
_MAX_TILE_ROWS = 512   # 2 MiB f32 tile; HBM roofline saturates by this size
_MIN_TILE_ROWS = 128   # don't shrink tiles below this just to get more steps
_MIN_GRID_STEPS = 8    # >= 4 steps per v7x TensorCore -> DMA/compute overlap


def _expsin_kernel(neg_a_ref, x_ref, o_ref):
    # neg_a_ref: SMEM (1,) scalar holding -a; x_ref/o_ref: VMEM (rows, 1024).
    neg_a = neg_a_ref[0]
    x = x_ref[...].astype(jnp.float32)
    # exp(-sin(a*x)) == exp(sin((-a)*x)): the wrapper pre-negates `a`, so no
    # per-vreg vector negate is emitted.
    # TODO(synk): jnp.sin lowers to a VALU range-reduction polynomial (not the
    # EUP); if v7x bf16 inputs prove VALU-bound, compute a*x and sin in bf16
    # on the VPU (accuracy permitting) to halve VALU work per element.
    o_ref[...] = jnp.exp(jnp.sin(neg_a * x)).astype(o_ref.dtype)


def _pick_tile_rows(rows):
    """Row-tile: <= 512 rows, >= 128 rows, aim for >= 8 grid steps."""
    if rows <= _MIN_TILE_ROWS:
        return rows                       # full-dim block (always layout-legal)
    t = min(_MAX_TILE_ROWS, max(_MIN_TILE_ROWS, pl.cdiv(rows, _MIN_GRID_STEPS)))
    return max(8, (t // 8) * 8)           # sublane-aligned


def exp_sin_activation(x, a, *, donate_x=False):
    """y = exp(-sin(a * x)). x: any shape, float dtype; a: scalar or (1,)."""
    orig_shape = x.shape
    dtype = x.dtype

    a_f32 = jnp.asarray(a, jnp.float32).reshape(())
    neg_a = (-a_f32).reshape(1)

    flat = x.reshape(-1)                   # zero-copy for contiguous x
    n = flat.shape[0]
    rows = n // _LANES
    n_aligned = rows * _LANES

    # <1024-element tail (if any): plain jnp, negligible cost, and it avoids
    # the pad/unpad full-array copies the previous revision paid.
    tail_y = None
    if n_aligned < n:
        x_tail = flat[n_aligned:]
        tail_y = jnp.exp(-jnp.sin(a_f32 * x_tail.astype(jnp.float32))).astype(dtype)

    if rows == 0:
        return tail_y.reshape(orig_shape)

    # Aligned prefix as a lane-dense [rows, 1024] slab in the native dtype
    # (zero-copy reshape when n is already a multiple of 1024).
    x2d = flat[:n_aligned].reshape(rows, _LANES)

    tile_rows = _pick_tile_rows(rows)
    grid = (pl.cdiv(rows, tile_rows),)     # boundary block masked by Pallas

    itemsize = jnp.dtype(dtype).itemsize
    cost = pl.CostEstimate(
        flops=2 * n_aligned,                       # mul + misc
        transcendentals=2 * n_aligned,             # sin + exp
        bytes_accessed=2 * n_aligned * itemsize,   # one read + one write pass
    )

    out2d = pl.pallas_call(
        _expsin_kernel,
        out_shape=jax.ShapeDtypeStruct((rows, _LANES), dtype),
        grid_spec=pltpu.PrefetchScalarGridSpec(
            num_scalar_prefetch=0,
            grid=grid,
            in_specs=[
                pl.BlockSpec(memory_space=pltpu.MemorySpace.SMEM),    # -a
                pl.BlockSpec((tile_rows, _LANES), lambda i: (i, 0)),  # x tile
            ],
            out_specs=pl.BlockSpec((tile_rows, _LANES), lambda i: (i, 0)),
        ),
        compiler_params=pltpu.CompilerParams(
            dimension_semantics=("parallel",),
        ),
        cost_estimate=cost,
        # Optional x-buffer reuse (same shape/dtype) when the caller donates x:
        # halves peak HBM footprint for large activations (esp. v5e 16 GiB).
        input_output_aliases=({1: 0} if donate_x else {}),
    )(neg_a, x2d)

    if tail_y is None:
        return out2d.reshape(orig_shape)
    return jnp.concatenate([out2d.reshape(-1), tail_y]).reshape(orig_shape)


if __name__ == "__main__":
    key = jax.random.PRNGKey(0)

    # Parameter init matches nn.Parameter(a * torch.ones(1)) with a=1.0.
    a_param = jnp.ones((1,), dtype=jnp.float32) * 1.0

    # 1) Small NCHW input consistent with a conv-style activation use
    #    (n = 2048, already 1024-aligned -> fully zero-copy wrapper path).
    x = jax.random.normal(key, (2, 4, 16, 16), dtype=jnp.float32)
    y = jax.block_until_ready(exp_sin_activation(x, a_param))
    ref = jnp.exp(-jnp.sin(a_param[0] * x))
    assert y.shape == x.shape and y.dtype == x.dtype
    assert jnp.allclose(y, ref, atol=1e-5, rtol=1e-5)

    # 2) Aligned but non-multiple-of-8 row count (full-dim block path).
    x2 = jax.random.normal(jax.random.PRNGKey(1), (2, 4, 32, 48), jnp.float32)
    y2 = jax.block_until_ready(exp_sin_activation(x2, a_param))
    ref2 = jnp.exp(-jnp.sin(a_param[0] * x2))
    assert jnp.allclose(y2, ref2, atol=1e-5, rtol=1e-5)

    # 3) Misaligned size (n = 1155): exercises the aligned-prefix + jnp-tail
    #    path, with a non-unit learned scalar.
    a_param2 = jnp.ones((1,), dtype=jnp.float32) * 0.7
    x3 = jax.random.normal(jax.random.PRNGKey(2), (3, 5, 7, 11), jnp.float32)
    y3 = jax.block_until_ready(exp_sin_activation(x3, a_param2))
    ref3 = jnp.exp(-jnp.sin(a_param2[0] * x3))
    assert y3.shape == x3.shape
    assert jnp.allclose(y3, ref3, atol=1e-5, rtol=1e-5)

    # 4) Multi-step grid with a partial boundary block (rows = 130 > 128).
    x4 = jax.random.normal(jax.random.PRNGKey(3), (1, 2, 260, 256), jnp.float32)
    y4 = jax.block_until_ready(exp_sin_activation(x4, a_param))
    ref4 = jnp.exp(-jnp.sin(a_param[0] * x4))
    assert jnp.allclose(y4, ref4, atol=1e-5, rtol=1e-5)

    # 5) Native-dtype path: bf16 in / bf16 out, f32 compute inside the kernel.
    x5 = x.astype(jnp.bfloat16)
    y5 = jax.block_until_ready(exp_sin_activation(x5, a_param))
    ref5 = jnp.exp(-jnp.sin(a_param[0] * x5.astype(jnp.float32))).astype(jnp.bfloat16)
    assert y5.dtype == jnp.bfloat16
    assert jnp.allclose(y5.astype(jnp.float32), ref5.astype(jnp.float32),
                        atol=2e-2, rtol=2e-2)

    print("KERNEL_OK")
</pallas_src>

<mosaic_0001>
module attributes {stable_mosaic.version = 11 : i64} {
  func.func @_expsin_kernel(%arg0: i32, %arg1: memref<1xf32, #tpu.memory_space<smem>>, %arg2: memref<2x1024xf32, #tpu.memory_space<vmem>>, %arg3: memref<2x1024xf32, #tpu.memory_space<vmem>>) attributes {dimension_semantics = [#tpu.dimension_semantics<parallel>], iteration_bounds = array<i64: 1>, scalar_prefetch = 0 : i64, scratch_operands = 0 : i64, tpu.core_type = #tpu.core_type<tc>, window_params = [{transform_indices = @transform_0, window_bounds = array<i64: 1>}, {transform_indices = @transform_1, window_bounds = array<i64: 2, 1024>}, {transform_indices = @transform_2, window_bounds = array<i64: 2, 1024>}]} {
    %c0 = arith.constant 0 : index
    %0 = memref.load %arg1[%c0] : memref<1xf32, #tpu.memory_space<smem>>
    %c0_0 = arith.constant 0 : index
    %c0_1 = arith.constant 0 : index
    %1 = vector.load %arg2[%c0_0, %c0_1] : memref<2x1024xf32, #tpu.memory_space<vmem>>, vector<2x1024xf32>
    %2 = vector.broadcast %0 : f32 to vector<2x1024xf32>
    %3 = arith.mulf %2, %1 : vector<2x1024xf32>
    %4 = math.sin %3 : vector<2x1024xf32>
    %5 = math.exp %4 : vector<2x1024xf32>
    %c0_2 = arith.constant 0 : index
    %c0_3 = arith.constant 0 : index
    %6 = vector.load %arg3[%c0_2, %c0_3] : memref<2x1024xf32, #tpu.memory_space<vmem>>, vector<2x1024xf32>
    tpu.vector_store %arg3[%c0_2, %c0_3], %5 {strides = array<i32>} : memref<2x1024xf32, #tpu.memory_space<vmem>>, vector<2x1024xf32>,
    return
  }
  func.func @transform_0(%arg0: i32) -> i32 {
    %c0_i32 = arith.constant 0 : i32
    %c0_i32_0 = arith.constant 0 : i32
    return %c0_i32 : i32
  }
  func.func @transform_1(%arg0: i32) -> (i32, i32) {
    %c0_i32 = arith.constant 0 : i32
    %c0_i32_0 = arith.constant 0 : i32
    return %arg0, %c0_i32 : i32, i32
  }
  func.func @transform_2(%arg0: i32) -> (i32, i32) {
    %c0_i32 = arith.constant 0 : i32
    %c0_i32_0 = arith.constant 0 : i32
    return %arg0, %c0_i32 : i32, i32
  }
}

</mosaic_0001>

<bundles_post_ra>
// kernel: tpu_custom_call.1
= control target key start
LH: loop header
LB: loop body
LE: loop exit
PB: predicated region body
PF: predicated region fallthrough
CT: control target
= control target key end

     0   :  { %8 = vsyncpa [#allocation4], 0  ;;  %s450_s0 = inlined_call_operand.<no memory space> [shape: f32[1], index: 0, kind: input, shape index: {}]   ;;  %s451_s1 = inlined_call_operand.hbm [shape: f32[2,1024], index: 1, kind: input, shape index: {}]   ;;  %s452_s2 = inlined_call_operand.hbm [shape: f32[2,1024], index: 2, kind: output, shape index: {}]  }
   0x1   :  { %9 = vsyncpa [#allocation5], 0  ;;  %s340_s9 = smov [#allocation3]  }
   0x2   :  { %s18_s10 = sshll.u32 %s340_s9, 4  ;;  %s19_s10 = int_to_ptr.vmem [resolvable:$true] %s18_s10 }
   0x3   :  { %s304_s11 = scalar_lea.vmem %s19_s10, 256  ;;  %p309_p1 = scmp.lt.s32.totalorder %s19_s10, %s19_s10 }
   0x4   :  { %p305_p0 = scmp.ne.s32.totalorder %s19_s10, %s304_s11  ;;  %p310_p2 = scmp.lt.s32.totalorder %s304_s11, %s304_s11 }
   0x6   :  { %p311_p3 = por %p310_p2, %p309_p1 }
   0x8   :  { %p312_p4 = pnand %p311_p3, %p305_p0 }
   0xa   :  { %315 = shalt.err (!%p312_p4)
}
   0xb   :  { %21 = dma.hbm_to_vmem [thread:$0]  %s451_s1, 256, %s19_s10, [#allocation4]  }
   0xc   :  { %336 = dma.done.wait [#allocation4], 256  }
   0xd   :  { %337 = vsyncadd [#allocation4], 4294967040  ;;  %v28_v0 = vstv %s450_s0  ;;  %v26_v1 = vld [vmem:[#allocation3] sm:$0xff]  ;;  %v27_v2 = vld [vmem:[#allocation3 + $0x8] sm:$0xff]  ;;  %v341_v27 = vmov 683565275  }
   0xe   :  { %v369_v3 = vmul.f32 %v28_v0, %v26_v1  ;;  %v371_v4 = vmul.f32 %v28_v0, %v27_v2  ;;  %v342_v29 = vmov 2475754826   ;;  %v343_v31 = vmov 2131351028   ;;  %s347_s0 = smov [#allocation6]  }
   0xf   :  { %v344_v33 = vmov 2102212464   ;;  %v345_v35 = vmov 920167782   ;;  %v346_v43 = vmov 1326507024  }
  0x10   :  { %v31_v5 = vand.u32 2147483647, %v369_v3  ;;  %v34_v6 = vand.u32 2139095040, %v369_v3  ;;  %v135_v7 = vand.u32 2147483647, %v371_v4  ;;  %v138_v8 = vand.u32 2139095040, %v371_v4 }
  0x11   :  { %vm33_vm14 = vcmp.lt.s32.totalorder %v369_v3, 0  ;;  %s251_s1 = sshll.u32 %s347_s0, 4  ;;  %s252_s1 = int_to_ptr.vmem [resolvable:$true] %s251_s1 }
  0x12   :  { %v35_v9 = vshrl.u32 %v34_v6, 23  ;;  %v38_v10 = vand.u32 8388607, %v31_v5  ;;  %v139_v11 = vshrl.u32 %v138_v8, 23  ;;  %v142_v12 = vand.u32 8388607, %v135_v7  ;;  %p321_p6 = scmp.lt.s32.totalorder %s252_s1, %s252_s1 }
  0x13   :  { %vm432_vm15 = vcmp.le.f32.partialorder %v31_v5, 0.7853982  ;;  %s316_s16 = scalar_lea.vmem %s252_s1, 256 }
  0x14   :  { %v260_v13 = vadd.s32 4294967169, %v35_v9  ;;  %v264_v14 = vadd.s32 4294967169, %v139_v11  ;;  %v39_v16 = vor.u32 8388608, %v38_v10  ;;  %v143_v17 = vor.u32 8388608, %v142_v12  ;;  %p317_p5 = scmp.ne.s32.totalorder %s252_s1, %s316_s16  ;;  %p322_p7 = scmp.lt.s32.totalorder %s316_s16, %s316_s16 }
  0x16   :  { %v41_v15 = vadd.s32 1, %v260_v13  ;;  %v145_v18 = vadd.s32 1, %v264_v14  ;;  %v381_v23 = vshll.u32 %v39_v16, 8  ;;  %v383_v25 = vshll.u32 %v143_v17, 8  ;;  %p323_p8 = por %p322_p7, %p321_p6 }
  0x18   :  { %vm42_vm0 = vcmp.gt.s32.totalorder %v41_v15, 0  ;;  %vm146_vm1 = vcmp.gt.s32.totalorder %v145_v18, 0  ;;  %p324_p9 = pnand %p323_p8, %p317_p5 }
  0x19   :  { %v43_v19 = vsel %vm42_vm0, %v41_v15, 0  ;;  %v147_v22 = vsel %vm146_vm1, %v145_v18, 0  ;;  %vm137_vm0 = vcmp.lt.s32.totalorder %v371_v4, 0  ;;  %vm136_vm1 = vcmp.le.f32.partialorder %v135_v7, 0.7853982 }
  0x1a   :  { %v44_v20 = vshrl.u32 %v43_v19, 5  ;;  %v45_v21 = vand.u32 31, %v43_v19  ;;  %v149_v24 = vand.u32 31, %v147_v22  ;;  %v385_v37 = vshrl.u32 %v147_v22, 5 }
  0x1c   :  { %v46_v26 = vsub.s32 32, %v45_v21  ;;  %v48_v28 = vshll.u32 %v341_v27, %v45_v21  ;;  %v51_v30 = vshll.u32 %v342_v29, %v45_v21  ;;  %v54_v32 = vshll.u32 %v343_v31, %v45_v21 }
  0x1d   :  { %v57_v34 = vshll.u32 %v344_v33, %v45_v21  ;;  %v60_v36 = vshll.u32 %v345_v35, %v45_v21  ;;  %vm63_vm2 = vcmp.lt.s32.totalorder %v44_v20, 1  ;;  %vm64_vm3 = vcmp.lt.s32.totalorder %v44_v20, 2 }
  0x1e   :  { %v47_v38 = vshrl.u32 %v341_v27, %v46_v26  ;;  %v49_v39 = vshrl.u32 %v342_v29, %v46_v26  ;;  %v52_v40 = vshrl.u32 %v343_v31, %v46_v26  ;;  %v55_v41 = vshrl.u32 %v344_v33, %v46_v26 }
  0x1f   :  { %v58_v42 = vshrl.u32 %v345_v35, %v46_v26  ;;  %v61_v44 = vshrl.u32 %v346_v43, %v46_v26  ;;  %vm66_vm4 = vcmp.lt.s32.totalorder %v44_v20, 4  ;;  %v150_v48 = vsub.s32 32, %v149_v24 }
  0x20   :  { %v50_v45 = vor.u32 %v49_v39, %v48_v28  ;;  %v53_v46 = vor.u32 %v52_v40, %v51_v30  ;;  %v56_v47 = vor.u32 %v55_v41, %v54_v32  ;;  %vm65_vm5 = vcmp.lt.s32.totalorder %v44_v20, 3 }
  0x21   :  { %v59_v49 = vor.u32 %v58_v42, %v57_v34  ;;  %v62_v50 = vor.u32 %v61_v44, %v60_v36  ;;  %v152_v51 = vshll.u32 %v341_v27, %v149_v24  ;;  %v155_v59 = vshll.u32 %v342_v29, %v149_v24 }
  0x22   :  { %v67_v52 = vsel %vm63_vm2, %v47_v38, %v50_v45  ;;  %v68_v53 = vsel %vm66_vm4, %v56_v47, 2102212464  ;;  %v71_v54 = vsel %vm63_vm2, %v50_v45, %v53_v46  ;;  %v75_v55 = vsel %vm63_vm2, %v53_v46, %v56_v47 }
  0x23   :  { %v69_v56 = vsel %vm65_vm5, %v53_v46, %v68_v53  ;;  %v72_v57 = vsel %vm66_vm4, %v59_v49, 920167782  ;;  %v76_v58 = vsel %vm66_vm4, %v62_v50, 1326507024  ;;  %v151_v62 = vshrl.u32 %v341_v27, %v150_v48 }
  0x24   :  { %v73_v60 = vsel %vm65_vm5, %v56_v47, %v72_v57  ;;  %v77_v61 = vsel %vm65_vm5, %v59_v49, %v76_v58  ;;  %v153_v63 = vshrl.u32 %v342_v29, %v150_v48  ;;  %v70_v0 = vsel %vm64_vm3, %v67_v52, %v69_v56 }
  0x25   :  { %v74_v1 = vsel %vm64_vm3, %v71_v54, %v73_v60  ;;  %v78_v2 = vsel %vm64_vm3, %v75_v55, %v77_v61  ;;  %v156_v6 = vshrl.u32 %v343_v31, %v150_v48  ;;  %v158_v14 = vshll.u32 %v343_v31, %v149_v24 }
  0x26   :  { %v394_v8 = vmul.u32.u64.low %v381_v23, %v78_v2  ;;  %v395_v9 = vmul.u32.u64.high %v381_v23, %v78_v2, %v394_v8  ;;  %v398_v10 = vmul.u32.u64.low %v381_v23, %v74_v1  ;;  %v399_v11 = vmul.u32.u64.high %v381_v23, %v74_v1, %v398_v10 }
  0x27   :  { %v154_v12 = vor.u32 %v153_v63, %v152_v51  ;;  %v157_v13 = vor.u32 %v156_v6, %v155_v59  ;;  %v159_v15 = vshrl.u32 %v344_v33, %v150_v48  ;;  %v161_v16 = vshll.u32 %v344_v33, %v149_v24 }
  0x28   :  { %v162_v17 = vshrl.u32 %v345_v35, %v150_v48  ;;  %v164_v18 = vshll.u32 %v345_v35, %v149_v24  ;;  %v165_v19 = vshrl.u32 %v346_v43, %v150_v48  ;;  %v86_v20 = vmul.u32 %v381_v23, %v70_v0 }
  0x29   :  { %v160_v21 = vor.u32 %v159_v15, %v158_v14  ;;  %vm167_vm6 = vcmp.lt.s32.totalorder %v385_v37, 1  ;;  %vm168_vm7 = vcmp.lt.s32.totalorder %v385_v37, 2  ;;  %vm88_vm8 = vc.u32 %v395_v9, %v398_v10 }
  0x2a   :  { %v89_v22 = vadd.s32 1, %v399_v11  ;;  %v163_v26 = vor.u32 %v162_v17, %v161_v16  ;;  %vm169_vm9 = vcmp.lt.s32.totalorder %v385_v37, 3  ;;  %v166_v27 = vor.u32 %v165_v19, %v164_v18 }
  0x2b   :  { %vm170_vm10 = vcmp.lt.s32.totalorder %v385_v37, 4  ;;  %v171_v28 = vsel %vm167_vm6, %v151_v62, %v154_v12  ;;  %v175_v24 = vsel %vm167_vm6, %v154_v12, %v157_v13  ;;  %v179_v31 = vsel %vm167_vm6, %v157_v13, %v160_v21 }
  0x2c   :  { %v90_v29 = vsel %vm88_vm8, %v89_v22, %v399_v11  ;;  %v172_v23 = vsel %vm170_vm10, %v160_v21, 2102212464  ;;  %v176_v30 = vsel %vm170_vm10, %v163_v26, 920167782  ;;  %v180_v35 = vsel %vm170_vm10, %v166_v27, 1326507024 }
  0x2d   :  { %v91_v32 = vadd.s32 %v90_v29, %v86_v20  ;;  %v173_v33 = vsel %vm169_vm9, %v157_v13, %v172_v23  ;;  %v177_v34 = vsel %vm169_vm9, %v160_v21, %v176_v30  ;;  %v181_v39 = vsel %vm169_vm9, %v163_v26, %v180_v35 }
  0x2e   :  { %v174_v36 = vsel %vm168_vm7, %v171_v28, %v173_v33  ;;  %v178_v38 = vsel %vm168_vm7, %v175_v24, %v177_v34  ;;  %v182_v41 = vsel %vm168_vm7, %v179_v31, %v181_v39  ;;  %v87_v60 = vadd.s32 %v398_v10, %v395_v9 }
  0x2f   :  { %v92_v40 = vadd.s32 536870912, %v91_v32  ;;  %v416_v42 = vmul.u32.u64.low %v383_v25, %v178_v38  ;;  %v417_v43 = vmul.u32.u64.high %v383_v25, %v178_v38, %v416_v42  ;;  %v190_v47 = vmul.u32 %v383_v25, %v174_v36 }
  0x30   :  { %v420_v44 = vmul.u32.u64.low %v383_v25, %v182_v41  ;;  %v421_v45 = vmul.u32.u64.high %v383_v25, %v182_v41, %v420_v44  ;;  %vm123_vm5 = vweird.f32 %v369_v3  ;;  %vm227_vm9 = vweird.f32 %v371_v4 }
  0x31   :  { %v93_v46 = vshrl.u32 %v92_v40, 30  ;;  %v193_v49 = vadd.s32 1, %v417_v43 }
  0x32   :  { %vm192_vm11 = vc.u32 %v421_v45, %v416_v42  ;;  %v191_v16 = vadd.s32 %v416_v42, %v421_v45 }
  0x33   :  { %v94_v48 = vshll.u32 %v93_v46, 30  ;;  %v194_v37 = vsel %vm192_vm11, %v193_v49, %v417_v43  ;;  %v117_v21 = vsub.s32 4, %v93_v46 }
  0x34   :  { %v195_v51 = vadd.s32 %v194_v37, %v190_v47 }
  0x35   :  { %v95_v50 = vsub.s32 %v91_v32, %v94_v48  ;;  %v118_v30 = vsel %vm33_vm14, %v117_v21, %v93_v46 }
  0x36   :  { %v196_v53 = vadd.s32 536870912, %v195_v51  ;;  %v120_v5 = vsel %vm432_vm15, 0, %v118_v30 }
  0x37   :  { %v97_v52 = vsub.s32 0, %v95_v50  ;;  %v124_v38 = vadd.s32 3, %v120_v5 }
  0x38   :  { %v197_v55 = vshrl.u32 %v196_v53, 30 }
  0x39   :  { %v261_v54 = vmin.u32 %v97_v52, %v95_v50  ;;  %v125_v43 = vand.u32 3, %v124_v38 }
  0x3a   :  { %v198_v57 = vshll.u32 %v197_v55, 30  ;;  %v221_v36 = vsub.s32 4, %v197_v55 }
  0x3b   :  { %v99_v56 = vclz %v261_v54  ;;  %vm130_vm2 = vcmp.eq.s32.totalorder %v125_v43, 2  ;;  %vm127_vm3 = vcmp.eq.s32.totalorder %v125_v43, 0  ;;  %vm126_vm4 = vcmp.lt.s32.totalorder %v125_v43, 2 }
  0x3c   :  { %v199_v59 = vsub.s32 %v195_v51, %v198_v57  ;;  %v222_v41 = vsel %vm137_vm0, %v221_v36, %v197_v55 }
  0x3d   :  { %v262_v58 = vadd.s32 4294967294, %v99_v56  ;;  %v224_v44 = vsel %vm136_vm1, 0, %v222_v41 }
  0x3e   :  { %v201_v61 = vsub.s32 0, %v199_v59  ;;  %v228_v48 = vadd.s32 3, %v224_v44 }
  0x3f   :  { %vm263_vm12 = vcmp.lt.s32.totalorder %v262_v58, 0 }
  0x40   :  { %v102_v25 = vsel %vm263_vm12, 0, %v262_v58  ;;  %v265_v1 = vmin.u32 %v201_v61, %v199_v59  ;;  %v229_v51 = vand.u32 3, %v228_v48 }
  0x41   :  { %v103_v62 = vsub.s32 32, %v102_v25  ;;  %v104_v63 = vshll.u32 %v95_v50, %v102_v25  ;;  %v107_v0 = vsub.s32 4294967266, %v102_v25 }
  0x42   :  { %v203_v8 = vclz %v265_v1  ;;  %vm234_vm6 = vcmp.eq.s32.totalorder %v229_v51, 2  ;;  %vm231_vm7 = vcmp.eq.s32.totalorder %v229_v51, 0  ;;  %vm230_vm8 = vcmp.lt.s32.totalorder %v229_v51, 2 }
  0x43   :  { %v105_v2 = vshrl.u32 %v87_v60, %v103_v62  ;;  %v108_v6 = vadd.s32 127, %v107_v0 }
  0x44   :  { %v266_v13 = vadd.s32 4294967294, %v203_v8 }
  0x45   :  { %v106_v11 = vor.u32 %v105_v2, %v104_v63  ;;  %v109_v12 = vshll.u32 %v108_v6, 23 }
  0x46   :  { %vm267_vm13 = vcmp.lt.s32.totalorder %v266_v13, 0 }
  0x47   :  { %v110_v14 = vor.u32 4788187, %v109_v12  ;;  %v113_v15 = vcvt.s32.f32 %v106_v11  ;;  %v206_v9 = vsel %vm267_vm13, 0, %v266_v13 }
  0x48   :  { %v207_v10 = vsub.s32 32, %v206_v9  ;;  %v208_v18 = vshll.u32 %v199_v59, %v206_v9  ;;  %v211_v19 = vsub.s32 4294967266, %v206_v9 }
  0x49   :  { %v111_v17 = vand.u32 2147483647, %v110_v14 }
  0x4a   :  { %v209_v22 = vshrl.u32 %v191_v16, %v207_v10  ;;  %v212_v26 = vadd.s32 127, %v211_v19 }
  0x4b   :  { %v114_v20 = vmul.f32 %v113_v15, %v111_v17 }
  0x4c   :  { %v210_v24 = vor.u32 %v209_v22, %v208_v18  ;;  %v213_v29 = vshll.u32 %v212_v26, 23 }
  0x4d   :  { %v115_v28 = vxor.u32 2147483648, %v114_v20 }
  0x4e   :  { %v214_v32 = vor.u32 4788187, %v213_v29  ;;  %v217_v33 = vcvt.s32.f32 %v210_v24 }
  0x4f   :  { %v116_v23 = vsel %vm33_vm14, %v115_v28, %v114_v20 }
  0x50   :  { %v119_v31 = vsel %vm432_vm15, %v369_v3, %v116_v23  ;;  %v215_v34 = vand.u32 2147483647, %v214_v32 }
  0x51   :  { %284 = vcosq.f32 %v119_v31 }
  0x52   :  { %286 = vsinq.f32 %v119_v31  ;;  %v218_v35 = vmul.f32 %v217_v33, %v215_v34 }
  0x54   :  { %v219_v39 = vxor.u32 2147483648, %v218_v35 }
  0x56   :  { %v220_v40 = vsel %vm137_vm0, %v219_v39, %v218_v35 }
  0x57   :  { %v223_v42 = vsel %vm136_vm1, %v371_v4, %v220_v40 }
  0x58   :  { %288 = vcosq.f32 %v223_v42 }
  0x59   :  { %290 = vsinq.f32 %v223_v42 }
  0x5e   :  { %v285_v45 = vpop.eup %284 }
  0x5f   :  { %v287_v46 = vpop.eup %286  ;;  %v131_v47 = vxor.u32 2147483648, %v285_v45 }
  0x60   :  { %v128_v49 = vxor.u32 2147483648, %v287_v46 }
  0x61   :  { %v132_v7 = vsel %vm130_vm2, %v131_v47, %v287_v46 }
  0x62   :  { %v129_v50 = vsel %vm127_vm3, %v285_v45, %v128_v49 }
  0x63   :  { %v133_v37 = vsel %vm126_vm4, %v129_v50, %v132_v7 }
  0x64   :  { %v134_v52 = vsel %vm123_vm5, nan, %v133_v37 }
  0x65   :  { %v239_v53 = vmul.f32 1.442695, %v134_v52  ;;  %v289_v54 = vpop.eup %288 }
  0x66   :  { %v291_v55 = vpop.eup %290  ;;  %v235_v56 = vxor.u32 2147483648, %v289_v54 }
  0x67   :  { %292 = vpow2.f32 %v239_v53  ;;  %v232_v57 = vxor.u32 2147483648, %v291_v55 }
  0x68   :  { %v236_v58 = vsel %vm234_vm6, %v235_v56, %v291_v55 }
  0x69   :  { %v233_v59 = vsel %vm231_vm7, %v289_v54, %v232_v57 }
  0x6a   :  { %v237_v60 = vsel %vm230_vm8, %v233_v59, %v236_v58 }
  0x6b   :  { %v238_v3 = vsel %vm227_vm9, nan, %v237_v60 }
  0x6c   :  { %v241_v25 = vmul.f32 1.442695, %v238_v3 }
  0x6e   :  { %294 = vpow2.f32 %v241_v25 }
  0x74   :  { %v293_v61 = vpop.eup %292 }
  0x75   :  { %243 = vst [vmem:[#allocation6] sm:$0xff] %v293_v61 }
  0x7b   :  { %v295_v62 = vpop.eup %294 }
  0x7c   :  { %244 = vst [vmem:[#allocation6 + $0x8] sm:$0xff] %v295_v62 }
  0x7d   :  { %327 = shalt.err (!%p324_p9)
}
  0x7e   :  { %254 = dma.vmem_to_hbm [thread:$0]  %s252_s1, 256, %s452_s2, [#allocation5]  }
  0x7f   :  { %338 = dma.done.wait [#allocation5], 256  }
  0x80   :  { %339 = vsyncadd [#allocation5], 4294967040 }
  0x81   :  { %258 = vsyncpa [#allocation4], 1 }
  0x82   :  { %259 = vsyncpa [#allocation5], 1 }

</bundles_post_ra>
